<compile_context>
chip_gen: v6e
topology: v6e:2x2x1
jax: 0.10.0
libtpu: 0.0.40
codegen_flags: <defaults>
</compile_context>

<pallas_src>
import jax
import jax.numpy as jnp
from jax.experimental import pallas as pl
from jax.experimental.pallas import tpu as pltpu


def _round_up(a: int, b: int) -> int:
    return ((a + b - 1) // b) * b


def linear_kernel(w_ref, b_ref, x_ref, o_ref):
    """One batch tile of y^T = w @ x^T + b, in a sublane-dense layout.

    w_ref: (F,)              f32 SMEM   (flattened torch weight (1, F))
    b_ref: (1,)              f32 SMEM
    x_ref: (F, tn//128, 128) f32 VMEM   dense tile of x^T
    o_ref: (tn//128, 128)    f32 VMEM   dense output slab
    """
    acc = jnp.full(o_ref.shape, b_ref[0], dtype=jnp.float32)   # bias broadcast
    # Static unrolled VPU multiply-accumulate over the (small) feature dim.
    # Each iteration loads one dense (tn//128, 128) slab from the ref, so the
    # whole (F, tn//128, 128) tile is never live in vregs at once.
    # TODO(synk): for large F, read row-chunks via lax.fori_loop(unroll=True)
    # with x_ref[pl.ds(f0, 8)] instead of a per-feature Python loop.
    for fi in range(x_ref.shape[0]):
        acc = acc + w_ref[fi] * x_ref[fi]
    o_ref[...] = acc


def _pick_vmem_limit() -> int:
    """Generation-aware scoped-VMEM limit with headroom."""
    phys = 64 * 1024 * 1024  # conservative default (v7x per-TC physical)
    try:
        info = pltpu.get_tpu_info()
        cap = getattr(info, "vmem_capacity_bytes", None)
        if cap:
            phys = int(cap)
    except Exception:
        pass
    # 3/4 of physical, capped at 96 MB: ~48 MB on v7x (64 MiB), 96 MB on
    # v5e/v6e (128 MiB). Leaves headroom for compiler-internal scratch.
    return min(max(phys * 3 // 4, 32 * 1024 * 1024), 96 * 1024 * 1024)


def linear_net_forward(x, weight, bias):
    """Pallas equivalent of LinearNet.forward: y = x @ weight.T + bias.

    x:      (N, F) float32
    weight: (1, F) float32   (PyTorch Linear layout: out_features x in_features)
    bias:   (1,)   float32
    returns (N, 1) float32
    """
    n, f = x.shape

    vmem_limit = _pick_vmem_limit()

    # ----- tile selection -------------------------------------------------
    # Pad N to the 128-lane granularity the dense reshape needs; force at
    # least 1024 rows so the (tn//128, 128) block never exceeds the array.
    n_pad = max(_round_up(n, 128), 1024)

    # Biggest tile that fits ~half the VMEM budget with double buffering:
    # per element we hold 2 bufs * (F inputs + 1 output) * 4 B.
    per_elem_bytes = 2 * (f + 1) * 4
    tn = (vmem_limit // 2) // per_elem_bytes
    tn = max(1024, (tn // 1024) * 1024)      # multiple of 1024 => dense sublanes
    tn = min(tn, (n_pad // 1024) * 1024 if n_pad >= 1024 else 1024)
    tn = max(1024, tn)
    # Keep >= 2 grid steps when there is enough work: pipelining + both
    # TensorCores on v7x ("parallel" axis shards across cores).
    if n_pad >= 2 * 1024:
        tn = min(tn, max(1024, (n_pad // 2 // 1024) * 1024))

    rows_total = n_pad // 128
    rows_tile = tn // 128                     # multiple of 8 (sublane-dense)
    grid = (pl.cdiv(rows_total, rows_tile),)  # partial edge block is masked

    # ----- layout plumbing in the wrapper ----------------------------------
    # TODO(synk): for a fully fused pipeline, have the producer emit x
    # feature-major (F, N) or allow input fusion of this transpose+pad into
    # the pallas_call; kept as plain XLA ops here for portability.
    xt = jnp.transpose(x.astype(jnp.float32))                 # (F, N)
    if n_pad != n:
        xt = jnp.pad(xt, ((0, 0), (0, n_pad - n)))            # (F, n_pad)
    xt = xt.reshape(f, rows_total, 128)                       # dense 3-D layout

    w = weight.reshape(-1).astype(jnp.float32)                # (F,)
    b = bias.reshape(-1).astype(jnp.float32)                  # (1,)

    out = pl.pallas_call(
        linear_kernel,
        out_shape=jax.ShapeDtypeStruct((rows_total, 128), jnp.float32),
        grid_spec=pltpu.PrefetchScalarGridSpec(
            num_scalar_prefetch=0,
            grid=grid,
            in_specs=[
                pl.BlockSpec(memory_space=pltpu.MemorySpace.SMEM),   # weight
                pl.BlockSpec(memory_space=pltpu.MemorySpace.SMEM),   # bias
                pl.BlockSpec((f, rows_tile, 128), lambda i: (0, i, 0)),
            ],
            out_specs=pl.BlockSpec((rows_tile, 128), lambda i: (i, 0)),
        ),
        compiler_params=pltpu.CompilerParams(
            dimension_semantics=("parallel",),   # independent batch tiles
            vmem_limit_bytes=vmem_limit,
        ),
    )(w, b, xt)

    # Back to the torch layout (N, 1), dropping the pad (row-major flatten
    # restores the original batch order).
    return out.reshape(n_pad)[:n].reshape(n, 1)


if __name__ == "__main__":
    key = jax.random.PRNGKey(0)
    k_x1, k_x2, k_w, k_b = jax.random.split(key, 4)

    # Module implies n_feature = 2 (two 2-D Gaussian blobs).
    n_feature = 2
    num_examples = 16  # small per-cluster count for the demo

    x1 = 2.0 + jax.random.normal(k_x1, (num_examples, n_feature), dtype=jnp.float32)
    x2 = -2.0 + jax.random.normal(k_x2, (num_examples, n_feature), dtype=jnp.float32)
    x = jnp.concatenate([x1, x2], axis=0)  # (32, 2)

    # torch.nn.Linear-style init shapes: weight (1, F), bias (1,).
    bound = 1.0 / (n_feature ** 0.5)
    weight = jax.random.uniform(k_w, (1, n_feature), minval=-bound, maxval=bound,
                                dtype=jnp.float32)
    bias = jax.random.uniform(k_b, (1,), minval=-bound, maxval=bound,
                              dtype=jnp.float32)

    y = linear_net_forward(x, weight, bias)
    jax.block_until_ready(y)

    # Reference check in plain JAX.
    y_ref = x @ weight.T + bias
    assert y.shape == (x.shape[0], 1)
    assert jnp.allclose(y, y_ref, atol=1e-5, rtol=1e-5)

    print("KERNEL_OK")
</pallas_src>

<mosaic_0001>
module attributes {stable_mosaic.version = 11 : i64} {
  func.func @linear_kernel(%arg0: i32, %arg1: memref<2xf32, #tpu.memory_space<smem>>, %arg2: memref<1xf32, #tpu.memory_space<smem>>, %arg3: memref<2x8x128xf32, #tpu.memory_space<vmem>>, %arg4: memref<8x128xf32, #tpu.memory_space<vmem>>) attributes {dimension_semantics = [#tpu.dimension_semantics<parallel>], iteration_bounds = array<i64: 1>, scalar_prefetch = 0 : i64, scratch_operands = 0 : i64, tpu.core_type = #tpu.core_type<tc>, window_params = [{transform_indices = @transform_0, window_bounds = array<i64: 2>}, {transform_indices = @transform_1, window_bounds = array<i64: 1>}, {transform_indices = @transform_2, window_bounds = array<i64: 2, 8, 128>}, {transform_indices = @transform_3, window_bounds = array<i64: 8, 128>}]} {
    %c0 = arith.constant 0 : index
    %0 = memref.load %arg2[%c0] : memref<1xf32, #tpu.memory_space<smem>>
    %1 = vector.broadcast %0 : f32 to vector<8x128xf32>
    %c0_0 = arith.constant 0 : index
    %2 = memref.load %arg1[%c0_0] : memref<2xf32, #tpu.memory_space<smem>>
    %c0_1 = arith.constant 0 : index
    %c0_2 = arith.constant 0 : index
    %c0_3 = arith.constant 0 : index
    %3 = vector.load %arg3[%c0_1, %c0_2, %c0_3] : memref<2x8x128xf32, #tpu.memory_space<vmem>>, vector<1x8x128xf32>
    %4 = vector.shape_cast %3 : vector<1x8x128xf32> to vector<8x128xf32>
    %5 = vector.broadcast %2 : f32 to vector<8x128xf32>
    %6 = arith.mulf %5, %4 : vector<8x128xf32>
    %7 = arith.addf %1, %6 : vector<8x128xf32>
    %c1 = arith.constant 1 : index
    %8 = memref.load %arg1[%c1] : memref<2xf32, #tpu.memory_space<smem>>
    %c1_4 = arith.constant 1 : index
    %c0_5 = arith.constant 0 : index
    %c0_6 = arith.constant 0 : index
    %9 = vector.load %arg3[%c1_4, %c0_5, %c0_6] : memref<2x8x128xf32, #tpu.memory_space<vmem>>, vector<1x8x128xf32>
    %10 = vector.shape_cast %9 : vector<1x8x128xf32> to vector<8x128xf32>
    %11 = vector.broadcast %8 : f32 to vector<8x128xf32>
    %12 = arith.mulf %11, %10 : vector<8x128xf32>
    %13 = arith.addf %7, %12 : vector<8x128xf32>
    %c0_7 = arith.constant 0 : index
    %c0_8 = arith.constant 0 : index
    %14 = vector.load %arg4[%c0_7, %c0_8] : memref<8x128xf32, #tpu.memory_space<vmem>>, vector<8x128xf32>
    tpu.vector_store %arg4[%c0_7, %c0_8], %13 {strides = array<i32>} : memref<8x128xf32, #tpu.memory_space<vmem>>, vector<8x128xf32>,
    return
  }
  func.func @transform_0(%arg0: i32) -> i32 {
    %c0_i32 = arith.constant 0 : i32
    %c0_i32_0 = arith.constant 0 : i32
    return %c0_i32 : i32
  }
  func.func @transform_1(%arg0: i32) -> i32 {
    %c0_i32 = arith.constant 0 : i32
    %c0_i32_0 = arith.constant 0 : i32
    return %c0_i32 : i32
  }
  func.func @transform_2(%arg0: i32) -> (i32, i32, i32) {
    %c0_i32 = arith.constant 0 : i32
    %c0_i32_0 = arith.constant 0 : i32
    %c0_i32_1 = arith.constant 0 : i32
    return %c0_i32, %arg0, %c0_i32_0 : i32, i32, i32
  }
  func.func @transform_3(%arg0: i32) -> (i32, i32) {
    %c0_i32 = arith.constant 0 : i32
    %c0_i32_0 = arith.constant 0 : i32
    return %arg0, %c0_i32 : i32, i32
  }
}

</mosaic_0001>

<bundles_post_ra>
// kernel: tpu_custom_call.1
= control target key start
LH: loop header
LB: loop body
LE: loop exit
PB: predicated region body
PF: predicated region fallthrough
CT: control target
= control target key end

     0   :  { %9 = vsyncpa [#allocation6], 0  ;;  %s174_s0 = inlined_call_operand.vmem [shape: f32[2], index: 0, kind: input, shape index: {}]   ;;  %s175_s1 = inlined_call_operand.<no memory space> [shape: f32[1], index: 1, kind: input, shape index: {}]   ;;  %s176_s2 = inlined_call_operand.hbm [shape: f32[2,8,128], index: 2, kind: input, shape index: {}]   ;;  %s177_s3 = inlined_call_operand.hbm [shape: f32[8,128], index: 3, kind: output, shape index: {}]  }
   0x1   :  { %10 = vsyncpa [#allocation4], 0 }
   0x2   :  { %11 = vsyncpa [#allocation5], 0  ;;  %s18_s14 = sshll.u32 %s174_s0, 4  ;;  %s19_s14 = int_to_ptr.vmem [resolvable:$true] %s18_s14 }
   0x3   :  { %s79_s15 = scalar_lea.vmem %s19_s14, 16  ;;  %p84_p1 = scmp.lt.s32.totalorder %s19_s14, %s19_s14 }
   0x4   :  { %p80_p0 = scmp.ne.s32.totalorder %s19_s14, %s79_s15  ;;  %p85_p2 = scmp.lt.s32.totalorder %s79_s15, %s79_s15 }
   0x6   :  { %p86_p3 = por %p85_p2, %p84_p1 }
   0x8   :  { %p87_p4 = pnand %p86_p3, %p80_p0 }
   0xa   :  { %90 = shalt.err (!%p87_p4)
}
   0xb   :  { %s137_s16 = smov [#allocation3]   ;;  %s138_s17 = smov [#allocation7]  }
   0xc   :  { %21 = dma.vmem_to_smem %s19_s14, 16, %s137_s16, [#allocation6]  }
   0xd   :  { %s29_s18 = sshll.u32 %s138_s17, 4  ;;  %s30_s18 = int_to_ptr.vmem [resolvable:$true] %s29_s18 }
   0xe   :  { %s99_s19 = scalar_lea.vmem %s30_s18, 256  ;;  %p104_p6 = scmp.lt.s32.totalorder %s30_s18, %s30_s18 }
   0xf   :  { %p100_p5 = scmp.ne.s32.totalorder %s30_s18, %s99_s19  ;;  %p105_p7 = scmp.lt.s32.totalorder %s99_s19, %s99_s19 }
  0x11   :  { %p106_p8 = por %p105_p7, %p104_p6 }
  0x13   :  { %p107_p9 = pnand %p106_p8, %p100_p5 }
  0x15   :  { %110 = shalt.err (!%p107_p9)
}
  0x16   :  { %s139_s0 = smov 128   ;;  %s140_s20 = smov 8  }
  0x17   :  { %35 = dma.hbm_to_vmem [thread:$0]  %s176_s2, 256, %s30_s18, [#allocation4], %s139_s0, %s139_s0, %s140_s20  }
  0x18   :  { %131 = dma.done.wait [#allocation6], 16  }
  0x19   :  { %132 = vsyncadd [#allocation6], 4294967280 }
  0x1a   :  { %133 = dma.done.wait [#allocation4], 256  }
  0x1b   :  { %134 = vsyncadd [#allocation4], 4294967040 }
  0x1c   :  { %42 = sfence }
  0x1d   :  { %s45_s23 = sld [smem:[#allocation3]]  ;;  %v46_v0 = vld [vmem:[#allocation7] sm:$0xff]  ;;  %v52_v1 = vld [vmem:[#allocation7 + $0x8] sm:$0xff]  ;;  %v44_v2 = vstv %s175_s1  ;;  %s141_s27 = smov [#allocation8]  }
  0x1e   :  { %s73_s24 = sld [smem:[#allocation3 + $0x1]]  ;;  %s63_s28 = sshll.u32 %s141_s27, 4  ;;  %s64_s28 = int_to_ptr.vmem [resolvable:$true] %s63_s28 }
  0x1f   :  { %s111_s2 = scalar_lea.vmem %s64_s28, 128  ;;  %p116_p11 = scmp.lt.s32.totalorder %s64_s28, %s64_s28 }
  0x20   :  { %p112_p10 = scmp.ne.s32.totalorder %s64_s28, %s111_s2  ;;  %p117_p12 = scmp.lt.s32.totalorder %s111_s2, %s111_s2 }
  0x22   :  { %p118_p13 = por %p117_p12, %p116_p11 }
  0x23   :  { %v47_v3 = vstv %s45_s23 }
  0x24   :  { %v48_v4 = vmul.f32 %v47_v3, %v46_v0  ;;  %v53_v5 = vstv %s73_s24  ;;  %p119_p0 = pnand %p118_p13, %p112_p10 }
  0x25   :  { %v54_v6 = vmul.f32 %v53_v5, %v52_v1 }
  0x26   :  { %v49_v7 = vadd.f32 %v48_v4, %v44_v2 }
  0x28   :  { %v55_v8 = vadd.f32 %v54_v6, %v49_v7 }
  0x2a   :  { %56 = vst [vmem:[#allocation8] sm:$0xff] %v55_v8 }
  0x2b   :  { %122 = shalt.err (!%p119_p0)
}
  0x2c   :  { %66 = dma.vmem_to_hbm [thread:$0]  %s64_s28, 128, %s177_s3, [#allocation5]  }
  0x2d   :  { %135 = dma.done.wait [#allocation5], 128  }
  0x2e   :  { %136 = vsyncadd [#allocation5], 4294967168 }
  0x2f   :  { %70 = vsyncpa [#allocation4], 1 }
  0x30   :  { %71 = vsyncpa [#allocation5], 1 }
  0x31   :  { %72 = vsyncpa [#allocation6], 1 }

</bundles_post_ra>
